<compile_context>
chip_gen: v7x
topology: tpu7x:2x2x1
jax: 0.10.0
libtpu: 0.0.40
codegen_flags: <defaults>
</compile_context>

<pallas_src>
import jax
import jax.numpy as jnp
from jax.experimental import pallas as pl
from jax.experimental.pallas import tpu as pltpu


# ----------------------------------------------------------------------------
# Kernel
# ----------------------------------------------------------------------------
def softmax_regression_kernel(x_ref, w_ref, b_ref, o_ref):
    """One batch tile: out = softmax(x @ W + b, axis=-1).

    x_ref: (TB, D)  bf16/f32 (already in matmul dtype -- no per-step casts)
    w_ref: (D, C)   same dtype as x, VMEM-resident across all grid steps
    b_ref: (1, C)   f32
    o_ref: (TB, C)  f32
    """
    # MXU matmul with f32 accumulation.
    logits = jnp.dot(x_ref[...], w_ref[...],
                     preferred_element_type=jnp.float32) + b_ref[...]

    # Numerically stable softmax over the class axis (dim=1 of the module).
    m = jnp.max(logits, axis=-1, keepdims=True)
    e = jnp.exp(logits - m)
    denom = jnp.sum(e, axis=-1, keepdims=True)
    # Exact divide: rows sum to exactly 1 (safe for log/sampling downstream).
    o_ref[...] = (e / denom).astype(o_ref.dtype)


# ----------------------------------------------------------------------------
# VMEM planning
# ----------------------------------------------------------------------------
def _vmem_budget_bytes():
    """Single VMEM plan shared by the tile chooser and vmem_limit_bytes.

    Stay comfortably under physical VMEM on every chip:
      v5e/v6e: 128 MiB physical (16 / 32 MiB default scoped limit)
      v7x:      64 MiB physical per TensorCore (32 MiB default scoped limit)
    28 MiB leaves >2x headroom on v7x and raises v5e's 16 MiB default.
    """
    try:
        physical = pltpu.get_tpu_info().vmem_capacity_bytes
    except Exception:  # interpret mode / older jax: assume smallest (v7x)
        physical = 64 * 1024 * 1024
    return max(min(physical // 2 - (4 << 20), 28 << 20), 12 << 20)


def _choose_batch_tile(B, D, C, *, x_bytes, out_bytes, vmem_budget,
                       max_tb=4096, min_grid_steps=2):
    """Largest batch tile (multiple of 8) fitting the VMEM budget.

    Budget model (BlockSpec allocates 2 buffers per operand, *including* the
    constant-index-map W and bias):
      resident = 2 * (D*C*x_bytes + C*4)          # W + bias, double-buffered
      per_row  = 2 * (D*x_bytes + C*out_bytes)    # x tile + out tile, dbl-buffered
    plus fixed headroom for in-kernel f32 intermediates (logits / exp).
    """
    resident = 2 * (D * C * x_bytes + C * 4)
    headroom = 2 * 1024 * 1024
    per_row = 2 * (D * x_bytes + C * out_bytes)
    avail = max(vmem_budget - resident - headroom, 8 * per_row)
    tb = min(avail // per_row, max_tb)
    # Guarantee >= min_grid_steps grid steps so the "parallel" batch axis can
    # shard across both v7x TensorCores; costs only ~0.35us/step on 1-TC chips.
    if min_grid_steps > 1 and B > 8:
        two_step_tb = -(-pl.cdiv(B, min_grid_steps) // 8) * 8  # round up to 8
        tb = min(tb, max(8, two_step_tb))
    if tb >= B:
        return B                        # full-extent block is always legal
    return max((int(tb) // 8) * 8, 8)   # sublane (8) alignment for partial tiles


# ----------------------------------------------------------------------------
# Wrapper
# ----------------------------------------------------------------------------
def softmax_regression(x, weight_t, bias, *, matmul_dtype=jnp.bfloat16,
                       batch_tile=None, pallas_min_batch=16):
    """Forward pass of SoftmaxRegressionModel.

    x:        [B, D]
    weight_t: [D, C]  -- nn.Linear weight, pre-transposed (and ideally already
                         stored in `matmul_dtype`) ONCE at parameter creation.
    bias:     [C]     f32
    returns:  [B, C]  f32 softmax probabilities
    """
    B, D = x.shape
    C = weight_t.shape[1]

    # Defensive casts to the HBM-streaming dtype (no-ops when params/activations
    # are already stored in bf16 upstream, which is the intended usage).
    w = weight_t if weight_t.dtype == matmul_dtype else weight_t.astype(matmul_dtype)
    xq = x if x.dtype == matmul_dtype else x.astype(matmul_dtype)
    b2d = bias.reshape(1, C).astype(jnp.float32)

    # Tiny-batch fallback: one grid step + custom-call overhead would dominate.
    if B < pallas_min_batch:
        logits = jnp.dot(xq, w, preferred_element_type=jnp.float32) + b2d
        return jax.nn.softmax(logits, axis=1)

    vmem_budget = _vmem_budget_bytes()
    x_bytes = jnp.dtype(matmul_dtype).itemsize
    tb = batch_tile if batch_tile is not None else _choose_batch_tile(
        B, D, C, x_bytes=x_bytes, out_bytes=4, vmem_budget=vmem_budget)
    grid = (pl.cdiv(B, tb),)

    cost = pl.CostEstimate(
        flops=2 * B * D * C,
        transcendentals=B * C,
        bytes_accessed=(B * D + D * C) * x_bytes + C * 4 + B * C * 4,
    )

    return pl.pallas_call(
        softmax_regression_kernel,
        out_shape=jax.ShapeDtypeStruct((B, C), jnp.float32),
        grid_spec=pl.GridSpec(
            grid=grid,
            in_specs=[
                pl.BlockSpec((tb, D), lambda i: (i, 0)),   # x: streamed over batch
                pl.BlockSpec((D, C), lambda i: (0, 0)),    # W: VMEM-resident
                pl.BlockSpec((1, C), lambda i: (0, 0)),    # b: VMEM-resident
            ],
            out_specs=pl.BlockSpec((tb, C), lambda i: (i, 0)),
        ),
        compiler_params=pltpu.CompilerParams(
            # Megacore: batch axis shards across v7x's 2 TCs; free on 1-TC chips.
            dimension_semantics=("parallel",),
            # Communicate the exact VMEM plan used by _choose_batch_tile to
            # Mosaic (default scoped limit: 16 MiB v5e / 32 MiB v6e,v7x).
            vmem_limit_bytes=vmem_budget,
        ),
        cost_estimate=cost,
    )(xq, w, b2d)


# ----------------------------------------------------------------------------
# Demo / self-test
# ----------------------------------------------------------------------------
if __name__ == "__main__":
    # Small shapes consistent with the module: batch=32, input_size=32, classes=16.
    B, D, C = 32, 32, 16

    key = jax.random.PRNGKey(0)
    kx, kw, kb = jax.random.split(key, 3)

    x = jax.random.normal(kx, (B, D), dtype=jnp.float32)
    # nn.Linear-like uniform init; weight created in PyTorch layout [C, D].
    bound = 1.0 / (D ** 0.5)
    weight = jax.random.uniform(kw, (C, D), minval=-bound, maxval=bound,
                                dtype=jnp.float32)
    bias = jax.random.uniform(kb, (C,), minval=-bound, maxval=bound,
                              dtype=jnp.float32)

    # Parameter prep done ONCE at init: transpose to [D, C] and store in the
    # HBM-streaming dtype (bf16 halves weight + activation traffic; the MXU
    # still accumulates in f32).
    matmul_dtype = jnp.bfloat16
    weight_t = jnp.asarray(weight.T, dtype=matmul_dtype)   # [D, C]

    out = softmax_regression(x, weight_t, bias, matmul_dtype=matmul_dtype)
    out = jax.block_until_ready(out)

    # Reference with the same operand precision as the kernel (bf16 operands,
    # f32 accumulation) -> should match tightly.
    x_q = x.astype(matmul_dtype).astype(jnp.float32)
    w_q = weight_t.astype(jnp.float32)
    ref_same_prec = jax.nn.softmax(x_q @ w_q + bias, axis=1)
    # Full-precision f32 reference -> loose sanity bound (bf16 operand rounding).
    ref_f32 = jax.nn.softmax(x @ weight.T + bias, axis=1)

    assert out.shape == (B, C)
    assert jnp.allclose(out, ref_same_prec, atol=1e-4, rtol=1e-4), \
        "mismatch vs same-precision reference"
    assert jnp.allclose(out, ref_f32, atol=2e-2, rtol=2e-2), \
        "mismatch vs f32 reference"
    assert jnp.allclose(jnp.sum(out, axis=1), 1.0, atol=1e-5), \
        "rows not normalized"

    print("KERNEL_OK")
</pallas_src>

<mosaic_0001>
module attributes {stable_mosaic.version = 11 : i64} {
  func.func @softmax_regression_kernel(%arg0: i32, %arg1: memref<16x32xbf16, #tpu.memory_space<vmem>>, %arg2: memref<32x16xbf16, #tpu.memory_space<vmem>>, %arg3: memref<1x16xf32, #tpu.memory_space<vmem>>, %arg4: memref<16x16xf32, #tpu.memory_space<vmem>>) attributes {dimension_semantics = [#tpu.dimension_semantics<parallel>], iteration_bounds = array<i64: 2>, scalar_prefetch = 0 : i64, scratch_operands = 0 : i64, tpu.core_type = #tpu.core_type<tc>, window_params = [{transform_indices = @transform_0, window_bounds = array<i64: 16, 32>}, {pipeline_mode = #tpu.pipeline_mode<synchronous>, transform_indices = @transform_1, window_bounds = array<i64: 32, 16>}, {pipeline_mode = #tpu.pipeline_mode<synchronous>, transform_indices = @transform_2, window_bounds = array<i64: 1, 16>}, {transform_indices = @transform_3, window_bounds = array<i64: 16, 16>}]} {
    %c0 = arith.constant 0 : index
    %c0_0 = arith.constant 0 : index
    %0 = vector.load %arg1[%c0, %c0_0] : memref<16x32xbf16, #tpu.memory_space<vmem>>, vector<16x32xbf16>
    %c0_1 = arith.constant 0 : index
    %c0_2 = arith.constant 0 : index
    %1 = vector.load %arg2[%c0_1, %c0_2] : memref<32x16xbf16, #tpu.memory_space<vmem>>, vector<32x16xbf16>
    %cst = arith.constant dense<0.000000e+00> : vector<16x16xf32>
    %2 = tpu.matmul %0, %1, %cst {dimension_numbers = #tpu.dot_dimension_numbers<[1], [0], [0], [1], [0, 0, 1, 1], [], []>} : vector<16x32xbf16>, vector<32x16xbf16>, vector<16x16xf32> -> vector<16x16xf32>
    %c0_3 = arith.constant 0 : index
    %c0_4 = arith.constant 0 : index
    %3 = vector.load %arg3[%c0_3, %c0_4] : memref<1x16xf32, #tpu.memory_space<vmem>>, vector<1x16xf32>
    %4 = vector.broadcast %3 : vector<1x16xf32> to vector<16x16xf32>
    %5 = arith.addf %2, %4 : vector<16x16xf32>
    %cst_5 = arith.constant dense<0xFF800000> : vector<16xf32>
    %6 = vector.multi_reduction <maximumf>, %5, %cst_5 [1] : vector<16x16xf32> to vector<16xf32>
    %7 = vector.shape_cast %6 : vector<16xf32> to vector<16x1xf32>
    %8 = vector.broadcast %7 : vector<16x1xf32> to vector<16x16xf32>
    %9 = arith.subf %5, %8 : vector<16x16xf32>
    %10 = math.exp %9 : vector<16x16xf32>
    %cst_6 = arith.constant dense<0.000000e+00> : vector<16xf32>
    %11 = vector.multi_reduction <add>, %10, %cst_6 [1] : vector<16x16xf32> to vector<16xf32>
    %12 = vector.shape_cast %11 : vector<16xf32> to vector<16x1xf32>
    %13 = vector.broadcast %12 : vector<16x1xf32> to vector<16x16xf32>
    %14 = arith.divf %10, %13 : vector<16x16xf32>
    %c0_7 = arith.constant 0 : index
    %c0_8 = arith.constant 0 : index
    %15 = vector.load %arg4[%c0_7, %c0_8] : memref<16x16xf32, #tpu.memory_space<vmem>>, vector<16x16xf32>
    tpu.vector_store %arg4[%c0_7, %c0_8], %14 {strides = array<i32>} : memref<16x16xf32, #tpu.memory_space<vmem>>, vector<16x16xf32>,
    return
  }
  func.func @transform_0(%arg0: i32) -> (i32, i32) {
    %c0_i32 = arith.constant 0 : i32
    %c0_i32_0 = arith.constant 0 : i32
    return %arg0, %c0_i32 : i32, i32
  }
  func.func @transform_1(%arg0: i32) -> (i32, i32) {
    %c0_i32 = arith.constant 0 : i32
    %c0_i32_0 = arith.constant 0 : i32
    %c0_i32_1 = arith.constant 0 : i32
    return %c0_i32, %c0_i32_0 : i32, i32
  }
  func.func @transform_2(%arg0: i32) -> (i32, i32) {
    %c0_i32 = arith.constant 0 : i32
    %c0_i32_0 = arith.constant 0 : i32
    %c0_i32_1 = arith.constant 0 : i32
    return %c0_i32, %c0_i32_0 : i32, i32
  }
  func.func @transform_3(%arg0: i32) -> (i32, i32) {
    %c0_i32 = arith.constant 0 : i32
    %c0_i32_0 = arith.constant 0 : i32
    return %arg0, %c0_i32 : i32, i32
  }
}

</mosaic_0001>

<bundles_post_ra>
// kernel: tpu_custom_call.1
= control target key start
LH: loop header
LB: loop body
LE: loop exit
PB: predicated region body
PF: predicated region fallthrough
CT: control target
= control target key end

     0   :  { %s409_s12 = smov 0   ;;  %s445_s0 = inlined_call_operand.vmem [shape: bf16[32,32], index: 0, kind: input, shape index: {}]   ;;  %s446_s1 = inlined_call_operand.vmem [shape: bf16[32,16], index: 1, kind: input, shape index: {}]   ;;  %s447_s2 = inlined_call_operand.vmem [shape: f32[1,16], index: 2, kind: input, shape index: {}]   ;;  %s448_s3 = inlined_call_operand.vmem [shape: f32[32,16], index: 3, kind: output, shape index: {}]  }
   0x1 LB: > { %s331_s13 = sadd.s32 4294967295, %s385_s12   ;;  %p335_p0 = scmp.ge.s32.totalorder %s385_s12, 1  ;;  %s385_s12 = sphi %s409_s12, %s13_s12  }
   0x2   : > { %p138_p1 = scmp.lt.s32.totalorder %s385_s12, 3 }
   0x4   : > { %p139_p2 = pnand %p335_p0, %p138_p1 }
   0x5   : > { %v368_v0 = vld [vmem:[%s446_s1] sm:$0xff] (!%p139_p2)   ;;  %v387_v1 = vmov (!%p139_p2), 0.0   ;;  %v369_v2 = vld [vmem:[%s446_s1 + $0x8] sm:$0xff] (!%p139_p2)   ;;  %vm388_vm0 = vmmov (!%p139_p2), 0   ;;  %s336_s18 = sshll.u32 (!%p139_p2), %s331_s13, 1  ;;  %vm205_vm1 = vcmask (!%p139_p2), 261120  }
   0x6   : > { %142 = sbr.rel (%p139_p2) target bundleno = 550 (0x226), region = 32  ;;  %350 = vmatprep.subr.bf16.mxu0 (!%p139_p2), %v387_v1  ;;  %354 = vmatprep.mubr.msk.bf16.mxu0 (!%p139_p2), %vm388_vm0, %v387_v1  ;;  %p163_p3 = scmp.lt.s32.totalorder (!%p139_p2), %s336_s18, 3  ;;  %v340_v4 = vld [vmem:[%s447_s2] ss:$0 sm:$0xff] (!%p139_p2)  ;;  %vm250_vm2 = vcmask (!%p139_p2), 130048  }
   0x7   : > { %351 = vmatpush3.bf16.msra.mxu0 (!%p139_p2), %v368_v0 }
   0x8   : > { %352 = vmatprep.subr.bf16.mxu0 (!%p139_p2), %v387_v1 }
   0xb   : > { %353 = vmatpush3.bf16.msra.mxu0 (!%p139_p2), %v369_v2 }
   0xd   : > { %s450_s18 = smov (!%p163_p3, %s336_s18), 3 }
   0xe   : > { %s337_s19 = sshll.u32 %s450_s18, 2  ;;  %s339_s25 = sshll.u32 %s450_s18, 3 }
   0xf   : > { %s166_s22 = scalar_lea.vmem %s445_s0, %s337_s19  ;;  %s172_s28 = scalar_lea.vmem %s448_s3, %s339_s25 }
  0x10   : > { %v370_v3 = vld [vmem:[%s166_s22] sm:$0xff]  }
  0x11   : > { %355 = vmatmul.mubr.msk.bf16.vlgmr.msra.gmra.mrb[0].mxu0 %vm205_vm1, %v370_v3 }
  0xe4   : > { %v243_v5 = vpop.f32.mrb[0].mxu0 }
  0xe5   : > { %v244_v6 = vadd.f32 %v340_v4, %v243_v5  ;;  %v356_v7 = vpop.f32.mrb[1].mxu0 }
  0xe6   : > { %v246_v8 = vpop.f32.mrb[2].mxu0 }
  0xe7   : > { %v247_v9 = vadd.f32 %v340_v4, %v246_v8  ;;  %v357_v10 = vpop.f32.mrb[3].mxu0  ;;  %v251_v11 = vsel %vm250_vm2, %v244_v6, -inf }
  0xe8   : > { %252 = vmax.xlane.f32.xlu0 %v251_v11 }
  0xe9   : > { %v254_v12 = vsel %vm250_vm2, %v247_v9, -inf }
  0xec   : > { %255 = vmax.xlane.f32.xlu0 %v254_v12 }
 0x175   : > { %v253_v13 = vpop.xlane.xlu0 %252 }
 0x176   : > { %v257_v14 = vsub.f32 %v244_v6, %v253_v13 }
 0x178   : > { %v259_v15 = vmul.f32 1.442695, %v257_v14 }
 0x179   : > { %v256_v16 = vpop.xlane.xlu0 %255 }
 0x17a   : > { %371 = vpow2.f32 %v259_v15  ;;  %v258_v17 = vsub.f32 %v247_v9, %v256_v16 }
 0x17c   : > { %v261_v18 = vmul.f32 1.442695, %v258_v17 }
 0x17e   : > { %373 = vpow2.f32 %v261_v18 }
 0x184   : > { %v372_v19 = vpop.eup %371 }
 0x185   : > { %v263_v20 = vsel %vm250_vm2, %v372_v19, 0.0 }
 0x186   : > { %264 = vadd.xlane.f32.xlu1 %v263_v20 }
 0x188   : > { %v374_v21 = vpop.eup %373 }
 0x189   : > { %v266_v22 = vsel %vm250_vm2, %v374_v21, 0.0 }
 0x18a   : > { %267 = vadd.xlane.f32.xlu1 %v266_v22 }
 0x213   : > { %v265_v23 = vpop.xlane.xlu1 %264 }
 0x214   : > { %375 = vrcp.f32 %v265_v23 }
 0x217   : > { %v268_v24 = vpop.xlane.xlu1 %267 }
 0x218   : > { %377 = vrcp.f32 %v268_v24 }
 0x21e   : > { %v376_v25 = vpop.eup %375 }
 0x21f   : > { %v270_v26 = vmul.f32 %v376_v25, %v372_v19 }
 0x221   : > { %273 = vst.msk [vmem:[%s172_s28] sm:$0xff] %vm250_vm2, %v270_v26 }
 0x222   : > { %v378_v27 = vpop.eup %377 }
 0x223   : > { %v272_v28 = vmul.f32 %v378_v27, %v374_v21 }
 0x225   : > { %274 = vst.msk [vmem:[%s172_s28 + $0x8] sm:$0xff] %vm250_vm2, %v272_v28 }
 0x226 PF: > { %s13_s12 = sadd.s32 1, %s385_s12  }
 0x227   : > { %p10_p4 = scmp.ge.s32.totalorder %s13_s12, 4  }
 0x229   :  { %12 = sbr.rel (!%p10_p4) target bundleno = 1 (0x1), region = 62 }

</bundles_post_ra>
